<compile_context>
chip_gen: v7x
topology: tpu7x:2x2x1
jax: 0.10.0
libtpu: 0.0.40
codegen_flags: <defaults>
</compile_context>

<pallas_src>
import functools

import jax
import jax.numpy as jnp
from jax.experimental import pallas as pl
from jax.experimental.pallas import tpu as pltpu


def _fused_gcn_kernel(adj_ref, normc_ref, normr_ref, feat_ref,
                      w1_ref, b1_ref, w2_ref, b2_ref, out_ref,
                      t1_ref, x1_ref, csum_ref, *, tm, n_nodes):
    """One row-block of adj per grid step; layer-2 + mean folded into epilogue."""
    i = pl.program_id(0)
    n_blocks = pl.num_programs(0)

    # ---- prologue (block 0): zero accumulators, compute t1 = (D H) W1 once ----
    @pl.when(i == 0)
    def _():
        csum_ref[...] = jnp.zeros_like(csum_ref)
        t1_ref[...] = jnp.dot(normc_ref[...] * feat_ref[...], w1_ref[...],
                              preferred_element_type=jnp.float32)

    row = pl.multiple_of(i * tm, tm)
    adj_blk = adj_ref[...].astype(jnp.float32)        # (tm, N): binary, bf16 -> f32 exact
    norm_blk = normc_ref[pl.ds(row, tm), :]           # (tm, 1) slice of resident norm

    # Readout fold: accumulate c = norm^T A  (column sums of D A), one pass over adj.
    csum_ref[...] += jnp.sum(adj_blk * norm_blk, axis=0, keepdims=True)

    # Layer 1 for this row block: x1 = relu(D (A t1) + b1)
    x1_blk = jnp.dot(adj_blk, t1_ref[...], preferred_element_type=jnp.float32)
    x1_ref[pl.ds(row, tm), :] = jnp.maximum(norm_blk * x1_blk + b1_ref[...], 0.0)

    # ---- epilogue (last block): layer 2 + mean_nodes as a tiny matvec chain ----
    @pl.when(i == n_blocks - 1)
    def _():
        inv_n = 1.0 / float(n_nodes)
        r = csum_ref[...] * normr_ref[...] * inv_n                    # (1, N)
        g1 = jnp.dot(r, x1_ref[...], preferred_element_type=jnp.float32)   # (1, h)
        out_ref[...] = (jnp.dot(g1, w2_ref[...],
                                preferred_element_type=jnp.float32)
                        + b2_ref[...]).astype(out_ref.dtype)


def dense_gcn_forward(adj, features, norm, params, tm=None):
    """DenseGCN.forward (conv1 -> relu -> conv2 -> mean_nodes) as one Pallas call."""
    w1, b1, w2, b2 = params
    n, f_in = features.shape
    h = w1.shape[1]
    c = w2.shape[1]

    if tm is None:
        tm = n
        for cand in (512, 256, 128, 64, 32, 16, 8):
            if n % cand == 0:
                tm = cand
                break
    assert n % tm == 0 and (tm % 8 == 0 or tm == n), "row tile must divide N, mult of 8"

    norm_c = norm.reshape(n, 1).astype(jnp.float32)   # (N, 1)
    norm_r = norm_c.reshape(1, n)                     # (1, N)
    adj_bf16 = adj.astype(jnp.bfloat16)               # binary adjacency: exact in bf16
    b1 = b1.reshape(1, h).astype(jnp.float32)
    b2 = b2.reshape(1, c).astype(jnp.float32)

    kernel = functools.partial(_fused_gcn_kernel, tm=tm, n_nodes=n)

    return pl.pallas_call(
        kernel,
        out_shape=jax.ShapeDtypeStruct((1, c), jnp.float32),
        grid=(n // tm,),
        in_specs=[
            pl.BlockSpec((tm, n), lambda i: (i, 0)),      # adj row block (streamed, bf16)
            pl.BlockSpec((n, 1), lambda i: (0, 0)),       # norm (column form, resident)
            pl.BlockSpec((1, n), lambda i: (0, 0)),       # norm (row form, resident)
            pl.BlockSpec((n, f_in), lambda i: (0, 0)),    # features (resident)
            pl.BlockSpec((f_in, h), lambda i: (0, 0)),    # w1
            pl.BlockSpec((1, h), lambda i: (0, 0)),       # b1
            pl.BlockSpec((h, c), lambda i: (0, 0)),       # w2
            pl.BlockSpec((1, c), lambda i: (0, 0)),       # b2
        ],
        out_specs=pl.BlockSpec((1, c), lambda i: (0, 0)),
        scratch_shapes=[
            pltpu.VMEM((n, h), jnp.float32),   # t1 = (D H) W1, computed once, reused
            pltpu.VMEM((n, h), jnp.float32),   # x1 rows (layer-1 output)
            pltpu.VMEM((1, n), jnp.float32),   # column-sum accumulator (norm^T A)
        ],
        compiler_params=pltpu.CompilerParams(
            dimension_semantics=("arbitrary",)),   # accumulators carried across blocks
    )(adj_bf16, norm_c, norm_r, features.astype(jnp.float32), w1, b1, w2, b2)


def _reference_forward(adj, features, norm, params):
    """Plain-JAX reference replicating the PyTorch/numpy path exactly."""
    w1, b1, w2, b2 = params
    norm = norm.reshape(-1, 1)

    def conv(a, hmat, nrm, w, b):
        hmat = hmat * nrm
        if w.shape[0] < w.shape[1]:          # in_feats < out_feats: A(DH) first
            y = (a @ hmat) @ w
        else:                                 # (DH)W first, then A @
            y = a @ (hmat @ w)
        return y * nrm + b

    x = jnp.maximum(conv(adj, features, norm, w1, b1), 0.0)
    x = conv(adj, x, norm, w2, b2)
    return jnp.mean(x, axis=0, keepdims=True)


if __name__ == "__main__":
    # Small synthetic graph: N nodes, DenseGCN(in_feats=32, h_feats=16, num_classes=8)
    N, in_feats, h_feats, num_classes = 64, 32, 16, 8

    key = jax.random.PRNGKey(0)
    k_adj, k_feat, k_w1, k_b1, k_w2, k_b2 = jax.random.split(key, 6)

    # Random symmetric binary adjacency with self-loops (no zero-degree nodes).
    a = (jax.random.uniform(k_adj, (N, N)) < 0.1).astype(jnp.float32)
    adj = jnp.clip(a + a.T + jnp.eye(N, dtype=jnp.float32), 0.0, 1.0)

    # DGL-style norm = deg^{-1/2}, shape (N, 1) after unsqueeze(1).
    deg = jnp.sum(adj, axis=1)
    norm = (1.0 / jnp.sqrt(deg)).reshape(N, 1).astype(jnp.float32)

    features = jax.random.normal(k_feat, (N, in_feats), dtype=jnp.float32)

    # Deterministic parameter init (PyTorch used torch.randn for weight and bias).
    w1 = jax.random.normal(k_w1, (in_feats, h_feats), dtype=jnp.float32)
    b1 = jax.random.normal(k_b1, (1, h_feats), dtype=jnp.float32)
    w2 = jax.random.normal(k_w2, (h_feats, num_classes), dtype=jnp.float32)
    b2 = jax.random.normal(k_b2, (1, num_classes), dtype=jnp.float32)
    params = (w1, b1, w2, b2)

    # tm=32 -> grid=(2,) so the streaming / accumulator path is exercised.
    out = dense_gcn_forward(adj, features, norm, params, tm=32)
    out = jax.block_until_ready(out)

    ref = _reference_forward(adj, features, norm, params)
    assert out.shape == (1, num_classes)
    assert jnp.allclose(out, ref, rtol=1e-4, atol=1e-4), "mismatch vs reference"

    print("KERNEL_OK")
</pallas_src>

<mosaic_0001>
module attributes {stable_mosaic.version = 11 : i64} {
  func.func @_fused_gcn_kernel(%arg0: i32, %arg1: memref<32x64xbf16, #tpu.memory_space<vmem>>, %arg2: memref<64x1xf32, #tpu.memory_space<vmem>>, %arg3: memref<1x64xf32, #tpu.memory_space<vmem>>, %arg4: memref<64x32xf32, #tpu.memory_space<vmem>>, %arg5: memref<32x16xf32, #tpu.memory_space<vmem>>, %arg6: memref<1x16xf32, #tpu.memory_space<vmem>>, %arg7: memref<16x8xf32, #tpu.memory_space<vmem>>, %arg8: memref<1x8xf32, #tpu.memory_space<vmem>>, %arg9: memref<1x8xf32, #tpu.memory_space<vmem>>, %arg10: memref<64x16xf32, #tpu.memory_space<vmem>>, %arg11: memref<64x16xf32, #tpu.memory_space<vmem>>, %arg12: memref<1x64xf32, #tpu.memory_space<vmem>>) attributes {dimension_semantics = [#tpu.dimension_semantics<arbitrary>], iteration_bounds = array<i64: 2>, scalar_prefetch = 0 : i64, scratch_operands = 3 : i64, tpu.core_type = #tpu.core_type<tc>, window_params = [{transform_indices = @transform_0, window_bounds = array<i64: 32, 64>}, {pipeline_mode = #tpu.pipeline_mode<synchronous>, transform_indices = @transform_1, window_bounds = array<i64: 64, 1>}, {pipeline_mode = #tpu.pipeline_mode<synchronous>, transform_indices = @transform_2, window_bounds = array<i64: 1, 64>}, {pipeline_mode = #tpu.pipeline_mode<synchronous>, transform_indices = @transform_3, window_bounds = array<i64: 64, 32>}, {pipeline_mode = #tpu.pipeline_mode<synchronous>, transform_indices = @transform_4, window_bounds = array<i64: 32, 16>}, {pipeline_mode = #tpu.pipeline_mode<synchronous>, transform_indices = @transform_5, window_bounds = array<i64: 1, 16>}, {pipeline_mode = #tpu.pipeline_mode<synchronous>, transform_indices = @transform_6, window_bounds = array<i64: 16, 8>}, {pipeline_mode = #tpu.pipeline_mode<synchronous>, transform_indices = @transform_7, window_bounds = array<i64: 1, 8>}, {pipeline_mode = #tpu.pipeline_mode<synchronous>, transform_indices = @transform_8, window_bounds = array<i64: 1, 8>}]} {
    %c0_i32 = arith.constant 0 : i32
    %0 = arith.cmpi eq, %arg0, %c0_i32 : i32
    %1 = arith.extui %0 : i1 to i32
    %c0_i32_0 = arith.constant 0 : i32
    %2 = arith.cmpi ne, %1, %c0_i32_0 : i32
    scf.if %2 {
      %cst_15 = arith.constant 0.000000e+00 : f32
      %30 = vector.broadcast %cst_15 : f32 to vector<1x64xf32>
      %c0_16 = arith.constant 0 : index
      %c0_17 = arith.constant 0 : index
      %31 = vector.load %arg12[%c0_16, %c0_17] : memref<1x64xf32, #tpu.memory_space<vmem>>, vector<1x64xf32>
      tpu.vector_store %arg12[%c0_16, %c0_17], %30 {strides = array<i32>} : memref<1x64xf32, #tpu.memory_space<vmem>>, vector<1x64xf32>,
      %c0_18 = arith.constant 0 : index
      %c0_19 = arith.constant 0 : index
      %32 = vector.load %arg2[%c0_18, %c0_19] : memref<64x1xf32, #tpu.memory_space<vmem>>, vector<64x1xf32>
      %c0_20 = arith.constant 0 : index
      %c0_21 = arith.constant 0 : index
      %33 = vector.load %arg4[%c0_20, %c0_21] : memref<64x32xf32, #tpu.memory_space<vmem>>, vector<64x32xf32>
      %34 = vector.broadcast %32 : vector<64x1xf32> to vector<64x32xf32>
      %35 = arith.mulf %34, %33 : vector<64x32xf32>
      %c0_22 = arith.constant 0 : index
      %c0_23 = arith.constant 0 : index
      %36 = vector.load %arg5[%c0_22, %c0_23] : memref<32x16xf32, #tpu.memory_space<vmem>>, vector<32x16xf32>
      %cst_24 = arith.constant dense<0.000000e+00> : vector<64x16xf32>
      %37 = tpu.matmul %35, %36, %cst_24 {dimension_numbers = #tpu.dot_dimension_numbers<[1], [0], [0], [1], [0, 0, 1, 1], [], []>} : vector<64x32xf32>, vector<32x16xf32>, vector<64x16xf32> -> vector<64x16xf32>
      %c0_25 = arith.constant 0 : index
      %c0_26 = arith.constant 0 : index
      %38 = vector.load %arg10[%c0_25, %c0_26] : memref<64x16xf32, #tpu.memory_space<vmem>>, vector<64x16xf32>
      tpu.vector_store %arg10[%c0_25, %c0_26], %37 {strides = array<i32>} : memref<64x16xf32, #tpu.memory_space<vmem>>, vector<64x16xf32>,
    } else {
    }
    %c32_i32 = arith.constant 32 : i32
    %3 = arith.muli %arg0, %c32_i32 : i32
    %4 = tpu.assume_multiple %3, 32 : i32
    %c0 = arith.constant 0 : index
    %c0_1 = arith.constant 0 : index
    %5 = vector.load %arg1[%c0, %c0_1] : memref<32x64xbf16, #tpu.memory_space<vmem>>, vector<32x64xbf16>
    %6 = arith.extf %5 : vector<32x64xbf16> to vector<32x64xf32>
    %7 = arith.index_cast %4 : i32 to index
    %c0_2 = arith.constant 0 : index
    %8 = vector.load %arg2[%7, %c0_2] : memref<64x1xf32, #tpu.memory_space<vmem>>, vector<32x1xf32>
    %c0_3 = arith.constant 0 : index
    %c0_4 = arith.constant 0 : index
    %9 = vector.load %arg12[%c0_3, %c0_4] : memref<1x64xf32, #tpu.memory_space<vmem>>, vector<1x64xf32>
    %10 = vector.broadcast %8 : vector<32x1xf32> to vector<32x64xf32>
    %11 = arith.mulf %6, %10 : vector<32x64xf32>
    %cst = arith.constant dense<0.000000e+00> : vector<64xf32>
    %12 = vector.multi_reduction <add>, %11, %cst [0] : vector<32x64xf32> to vector<64xf32>
    %13 = vector.shape_cast %12 : vector<64xf32> to vector<1x64xf32>
    %14 = arith.addf %9, %13 : vector<1x64xf32>
    %c0_5 = arith.constant 0 : index
    %c0_6 = arith.constant 0 : index
    %15 = vector.load %arg12[%c0_5, %c0_6] : memref<1x64xf32, #tpu.memory_space<vmem>>, vector<1x64xf32>
    tpu.vector_store %arg12[%c0_5, %c0_6], %14 {strides = array<i32>} : memref<1x64xf32, #tpu.memory_space<vmem>>, vector<1x64xf32>,
    %c0_7 = arith.constant 0 : index
    %c0_8 = arith.constant 0 : index
    %16 = vector.load %arg10[%c0_7, %c0_8] : memref<64x16xf32, #tpu.memory_space<vmem>>, vector<64x16xf32>
    %cst_9 = arith.constant dense<0.000000e+00> : vector<32x16xf32>
    %17 = tpu.matmul %6, %16, %cst_9 {dimension_numbers = #tpu.dot_dimension_numbers<[1], [0], [0], [1], [0, 0, 1, 1], [], []>} : vector<32x64xf32>, vector<64x16xf32>, vector<32x16xf32> -> vector<32x16xf32>
    %18 = vector.broadcast %8 : vector<32x1xf32> to vector<32x16xf32>
    %19 = arith.mulf %18, %17 : vector<32x16xf32>
    %c0_10 = arith.constant 0 : index
    %c0_11 = arith.constant 0 : index
    %20 = vector.load %arg6[%c0_10, %c0_11] : memref<1x16xf32, #tpu.memory_space<vmem>>, vector<1x16xf32>
    %21 = vector.broadcast %20 : vector<1x16xf32> to vector<32x16xf32>
    %22 = arith.addf %19, %21 : vector<32x16xf32>
    %cst_12 = arith.constant 0.000000e+00 : f32
    %23 = vector.broadcast %cst_12 : f32 to vector<32x16xf32>
    %24 = arith.maximumf %22, %23 : vector<32x16xf32>
    %25 = arith.index_cast %4 : i32 to index
    %c0_13 = arith.constant 0 : index
    %26 = vector.load %arg11[%25, %c0_13] : memref<64x16xf32, #tpu.memory_space<vmem>>, vector<32x16xf32>
    tpu.vector_store %arg11[%25, %c0_13], %24 {strides = array<i32>} : memref<64x16xf32, #tpu.memory_space<vmem>>, vector<32x16xf32>,
    %c1_i32 = arith.constant 1 : i32
    %27 = arith.cmpi eq, %arg0, %c1_i32 : i32
    %28 = arith.extui %27 : i1 to i32
    %c0_i32_14 = arith.constant 0 : i32
    %29 = arith.cmpi ne, %28, %c0_i32_14 : i32
    scf.if %29 {
      %c0_15 = arith.constant 0 : index
      %c0_16 = arith.constant 0 : index
      %30 = vector.load %arg12[%c0_15, %c0_16] : memref<1x64xf32, #tpu.memory_space<vmem>>, vector<1x64xf32>
      %c0_17 = arith.constant 0 : index
      %c0_18 = arith.constant 0 : index
      %31 = vector.load %arg3[%c0_17, %c0_18] : memref<1x64xf32, #tpu.memory_space<vmem>>, vector<1x64xf32>
      %32 = arith.mulf %30, %31 : vector<1x64xf32>
      %cst_19 = arith.constant 1.562500e-02 : f32
      %33 = vector.broadcast %cst_19 : f32 to vector<1x64xf32>
      %34 = arith.mulf %32, %33 : vector<1x64xf32>
      %c0_20 = arith.constant 0 : index
      %c0_21 = arith.constant 0 : index
      %35 = vector.load %arg11[%c0_20, %c0_21] : memref<64x16xf32, #tpu.memory_space<vmem>>, vector<64x16xf32>
      %cst_22 = arith.constant dense<0.000000e+00> : vector<1x16xf32>
      %36 = tpu.matmul %34, %35, %cst_22 {dimension_numbers = #tpu.dot_dimension_numbers<[1], [0], [0], [1], [0, 0, 1, 1], [], []>} : vector<1x64xf32>, vector<64x16xf32>, vector<1x16xf32> -> vector<1x16xf32>
      %c0_23 = arith.constant 0 : index
      %c0_24 = arith.constant 0 : index
      %37 = vector.load %arg7[%c0_23, %c0_24] : memref<16x8xf32, #tpu.memory_space<vmem>>, vector<16x8xf32>
      %cst_25 = arith.constant dense<0.000000e+00> : vector<1x8xf32>
      %38 = tpu.matmul %36, %37, %cst_25 {dimension_numbers = #tpu.dot_dimension_numbers<[1], [0], [0], [1], [0, 0, 1, 1], [], []>} : vector<1x16xf32>, vector<16x8xf32>, vector<1x8xf32> -> vector<1x8xf32>
      %c0_26 = arith.constant 0 : index
      %c0_27 = arith.constant 0 : index
      %39 = vector.load %arg8[%c0_26, %c0_27] : memref<1x8xf32, #tpu.memory_space<vmem>>, vector<1x8xf32>
      %40 = arith.addf %38, %39 : vector<1x8xf32>
      %c0_28 = arith.constant 0 : index
      %c0_29 = arith.constant 0 : index
      %41 = vector.load %arg9[%c0_28, %c0_29] : memref<1x8xf32, #tpu.memory_space<vmem>>, vector<1x8xf32>
      tpu.vector_store %arg9[%c0_28, %c0_29], %40 {strides = array<i32>} : memref<1x8xf32, #tpu.memory_space<vmem>>, vector<1x8xf32>,
    } else {
    }
    return
  }
  func.func @transform_0(%arg0: i32) -> (i32, i32) {
    %c0_i32 = arith.constant 0 : i32
    %c0_i32_0 = arith.constant 0 : i32
    return %arg0, %c0_i32 : i32, i32
  }
  func.func @transform_1(%arg0: i32) -> (i32, i32) {
    %c0_i32 = arith.constant 0 : i32
    %c0_i32_0 = arith.constant 0 : i32
    %c0_i32_1 = arith.constant 0 : i32
    return %c0_i32, %c0_i32_0 : i32, i32
  }
  func.func @transform_2(%arg0: i32) -> (i32, i32) {
    %c0_i32 = arith.constant 0 : i32
    %c0_i32_0 = arith.constant 0 : i32
    %c0_i32_1 = arith.constant 0 : i32
    return %c0_i32, %c0_i32_0 : i32, i32
  }
  func.func @transform_3(%arg0: i32) -> (i32, i32) {
    %c0_i32 = arith.constant 0 : i32
    %c0_i32_0 = arith.constant 0 : i32
    %c0_i32_1 = arith.constant 0 : i32
    return %c0_i32, %c0_i32_0 : i32, i32
  }
  func.func @transform_4(%arg0: i32) -> (i32, i32) {
    %c0_i32 = arith.constant 0 : i32
    %c0_i32_0 = arith.constant 0 : i32
    %c0_i32_1 = arith.constant 0 : i32
    return %c0_i32, %c0_i32_0 : i32, i32
  }
  func.func @transform_5(%arg0: i32) -> (i32, i32) {
    %c0_i32 = arith.constant 0 : i32
    %c0_i32_0 = arith.constant 0 : i32
    %c0_i32_1 = arith.constant 0 : i32
    return %c0_i32, %c0_i32_0 : i32, i32
  }
  func.func @transform_6(%arg0: i32) -> (i32, i32) {
    %c0_i32 = arith.constant 0 : i32
    %c0_i32_0 = arith.constant 0 : i32
    %c0_i32_1 = arith.constant 0 : i32
    return %c0_i32, %c0_i32_0 : i32, i32
  }
  func.func @transform_7(%arg0: i32) -> (i32, i32) {
    %c0_i32 = arith.constant 0 : i32
    %c0_i32_0 = arith.constant 0 : i32
    %c0_i32_1 = arith.constant 0 : i32
    return %c0_i32, %c0_i32_0 : i32, i32
  }
  func.func @transform_8(%arg0: i32) -> (i32, i32) {
    %c0_i32 = arith.constant 0 : i32
    %c0_i32_0 = arith.constant 0 : i32
    %c0_i32_1 = arith.constant 0 : i32
    return %c0_i32, %c0_i32_0 : i32, i32
  }
}

</mosaic_0001>

<bundles_post_ra>
// kernel: tpu_custom_call.1
= control target key start
LH: loop header
LB: loop body
LE: loop exit
PB: predicated region body
PF: predicated region fallthrough
CT: control target
= control target key end

     0   :  { %13 = vsyncpa [#allocation6], 0  ;;  %s1217_s27 = smov 0   ;;  %s1376_s0 = inlined_call_operand.vmem [shape: bf16[64,64], index: 0, kind: input, shape index: {}]   ;;  %s1377_s1 = inlined_call_operand.vmem [shape: f32[64,1], index: 1, kind: input, shape index: {}]   ;;  %s1378_s2 = inlined_call_operand.vmem [shape: f32[1,64], index: 2, kind: input, shape index: {}]   ;;  %s1379_s3 = inlined_call_operand.vmem [shape: f32[64,32], index: 3, kind: input, shape index: {}]   ;;  %s1380_s4 = inlined_call_operand.vmem [shape: f32[32,16], index: 4, kind: input, shape index: {}]   ;;  %s1381_s5 = inlined_call_operand.vmem [shape: f32[1,16], index: 5, kind: input, shape index: {}]   ;;  %s1382_s6 = inlined_call_operand.vmem [shape: f32[16,8], index: 6, kind: input, shape index: {}]   ;;  %s1383_s7 = inlined_call_operand.vmem [shape: f32[1,8], index: 7, kind: input, shape index: {}]   ;;  %s1384_s8 = inlined_call_operand.hbm [shape: f32[1,8], index: 8, kind: output, shape index: {}]  }
   0x1 LB: > { %s1223_s28 = sadd.s32 4294967295, %s1163_s27   ;;  %p913_p0 = scmp.ge.s32.totalorder %s1163_s27, 1  ;;  %s1163_s27 = sphi %s1217_s27, %s19_s27  }
   0x2   : > { %p259_p1 = scmp.lt.s32.totalorder %s1163_s27, 3 }
   0x4   : > { %p260_p2 = pnand %p913_p0, %p259_p1 }
   0x5   : > { %s914_s29 = sshll.u32 (!%p260_p2), %s1223_s28, 2  ;;  %p916_p4 = scmp.ne.s32.totalorder (!%p260_p2), %s1223_s28, 0 }
   0x6   : > { %263 = sbr.rel (%p260_p2) target bundleno = 1089 (0x441), region = 52  ;;  %p289_p3 = scmp.lt.s32.totalorder (!%p260_p2), %s914_s29, 7 }
   0xd   : > { %s1386_s29 = smov (!%p289_p3, %s914_s29), 7  ;;  %297 = sbr.rel (%p916_p4) target bundleno = 372 (0x174), region = 56 }
   0xe   : > { %s915_s30 = sshll.u32 %s1386_s29, 2  ;;  %v301_v0 = vld [vmem:[%s1377_s1 + $0x8] sm:$0xff] (!%p916_p4)  ;;  %v300_v1 = vld [vmem:[%s1377_s1] sm:$0xff] (!%p916_p4)  ;;  %vm298_vm0 = vcmask (!%p916_p4), 516096   ;;  %v1165_v2 = vmov (!%p916_p4), 0   ;;  %v1166_v3 = vmov (!%p916_p4), 0.0  }
   0xf   : > { %s1231_s11 = scalar_lea.vmem %s1376_s0, %s915_s30  ;;  %1124 = vset.pattern.permute.xlu1 (!%p916_p4), %v1165_v2  ;;  %1123 = vset.pattern.permute.xlu0 (!%p916_p4), %v1165_v2  ;;  %299 = vst.msk [vmem:[#allocation4] sm:$0x1] (!%p916_p4), %vm298_vm0, %v1166_v3  ;;  %v305_v4 = vld [vmem:[%s1377_s1 + $0x28] sm:$0xff] (!%p916_p4)  ;;  %v304_v5 = vld [vmem:[%s1377_s1 + $0x20] sm:$0xff] (!%p916_p4)  ;;  %v366_v8 = vld [vmem:[%s1380_s4 + $0x10] sm:$0xff] (!%p916_p4)  ;;  %vm368_vm1 = vcmask (!%p916_p4), 261120  }
  0x10   : > { %323 = vperm.xlu1 (!%p916_p4), %1124, %v301_v0   ;;  %318 = vperm.xlu0 (!%p916_p4), %1123, %v300_v1   ;;  %v364_v6 = vld [vmem:[%s1380_s4] sm:$0xff] (!%p916_p4)  ;;  %v365_v7 = vld [vmem:[%s1380_s4 + $0x8] sm:$0xff] (!%p916_p4)  ;;  %v367_v9 = vld [vmem:[%s1380_s4 + $0x18] sm:$0xff] (!%p916_p4)  ;;  %vm498_vm2 = vcmask (!%p916_p4), 130048  }
  0x11   : > { %v1051_v10 = vpack.c.bf16 (!%p916_p4), %v365_v7, %v364_v6  ;;  %v1055_v11 = vpack.c.bf16 (!%p916_p4), %v367_v9, %v366_v8  ;;  %v306_v12 = vld [vmem:[%s1377_s1 + $0x30] sm:$0xff] (!%p916_p4)  ;;  %v307_v14 = vld [vmem:[%s1377_s1 + $0x38] sm:$0xff] (!%p916_p4)  ;;  %v309_v16 = vld [vmem:[%s1379_s3 + $0x8] sm:$0xff] (!%p916_p4) }
  0x12   : > { %v302_v13 = vld [vmem:[%s1377_s1 + $0x10] sm:$0xff] (!%p916_p4)  ;;  %v303_v15 = vld [vmem:[%s1377_s1 + $0x18] sm:$0xff] (!%p916_p4)  ;;  %v308_v17 = vld [vmem:[%s1379_s3] sm:$0xff] (!%p916_p4) }
  0x13   : > { %1052 = vmatprep.subr.bf16.mxu0 (!%p916_p4), %v1051_v10  ;;  %1090 = vmatprep.subr.bf16.mxu1 (!%p916_p4), %v1051_v10  ;;  %v313_v22 = vld [vmem:[%s1379_s3 + $0x28] sm:$0xff] (!%p916_p4)  ;;  %v312_v23 = vld [vmem:[%s1379_s3 + $0x20] sm:$0xff] (!%p916_p4)  ;;  %v314_v28 = vld [vmem:[%s1379_s3 + $0x30] sm:$0xff] (!%p916_p4) }
  0x14   : > { %343 = vperm.xlu1 %1124, %v305_v4   ;;  %338 = vperm.xlu0 %1123, %v304_v5   ;;  %v310_v29 = vld [vmem:[%s1379_s3 + $0x10] sm:$0xff]  ;;  %v315_v34 = vld [vmem:[%s1379_s3 + $0x38] sm:$0xff] }
  0x15   : > { %1054 = vmatpush3.bf16.msra.mxu0 %v1051_v10  ;;  %1092 = vmatpush3.bf16.msra.mxu1 %v1051_v10  ;;  %v311_v35 = vld [vmem:[%s1379_s3 + $0x18] sm:$0xff] }
  0x16   : > { %1056 = vmatprep.subr.bf16.mxu0 %v1055_v11  ;;  %1091 = vmatprep.subr.bf16.mxu1 %v1055_v11 }
  0x18   : > { %348 = vperm.xlu1 %1124, %v306_v12   ;;  %328 = vperm.xlu0 %1123, %v302_v13  }
  0x19   : > { %1058 = vmatpush3.bf16.msra.mxu0 %v1055_v11  ;;  %1093 = vmatpush3.bf16.msra.mxu1 %v1055_v11 }
  0x1c   : > { %353 = vperm.xlu1 %1124, %v307_v14   ;;  %333 = vperm.xlu0 %1123, %v303_v15  }
  0x8f   : > { %v324_v18 = vpop.permute.xlu1 %323  ;;  %v319_v19 = vpop.permute.xlu0 %318 }
  0x90   : > { %v357_v20 = vmul.f32 %v324_v18, %v309_v16  ;;  %v356_v21 = vmul.f32 %v319_v19, %v308_v17 }
  0x92   : > { %991 = vmatprep.mubr.msk.f32.mxu0 %vm368_vm1, %v356_v21 }
  0x93   : > { %v344_v24 = vpop.permute.xlu1 %343  ;;  %992 = vmatmul.mubr.msk.f32.vlgmr.msra.gmra.mrb[0].mxu0 %vm368_vm1, %v357_v20  ;;  %v339_v25 = vpop.permute.xlu0 %338 }
  0x94   : > { %v361_v26 = vmul.f32 %v344_v24, %v313_v22  ;;  %v360_v27 = vmul.f32 %v339_v25, %v312_v23 }
  0x96   : > { %997 = vmatprep.mubr.msk.f32.mxu1 %vm368_vm1, %v360_v27 }
  0x97   : > { %v349_v30 = vpop.permute.xlu1 %348  ;;  %998 = vmatmul.mubr.msk.f32.vlgmr.msra.gmra.mrb[0].mxu1 %vm368_vm1, %v361_v26  ;;  %v329_v31 = vpop.permute.xlu0 %328 }
  0x98   : > { %v362_v32 = vmul.f32 %v349_v30, %v314_v28  ;;  %v358_v33 = vmul.f32 %v329_v31, %v310_v29 }
  0x9a   : > { %994 = vmatprep.mubr.msk.f32.mxu0 %vm368_vm1, %v358_v33  ;;  %1000 = vmatprep.mubr.msk.f32.mxu1 %vm368_vm1, %v362_v32 }
  0x9b   : > { %v354_v36 = vpop.permute.xlu1 %353  ;;  %v334_v37 = vpop.permute.xlu0 %333 }
  0x9c   : > { %v363_v38 = vmul.f32 %v354_v36, %v315_v34  ;;  %v359_v39 = vmul.f32 %v334_v37, %v311_v35 }
  0x9e   : > { %995 = vmatmul.mubr.msk.f32.gmra.mrb[2].mxu0 %vm368_vm1, %v359_v39  ;;  %1001 = vmatmul.mubr.msk.f32.gmra.mrb[2].mxu1 %vm368_vm1, %v363_v38 }
 0x166   : > { %v993_v40 = vpop.f32.mrb[0].mxu0 }
 0x167   : > { %500 = vst.msk [vmem:[#allocation2 + $0x8] sm:$0xff] %vm498_vm2, %v993_v40  ;;  %v459_v41 = vpop.f32.mrb[1].mxu0 }
 0x168   : > { %499 = vst.msk [vmem:[#allocation2] sm:$0xff] %vm498_vm2, %v459_v41 }
 0x16a   : > { %v999_v42 = vpop.f32.mrb[0].mxu1 }
 0x16b   : > { %504 = vst.msk [vmem:[#allocation2 + $0x28] sm:$0xff] %vm498_vm2, %v999_v42  ;;  %v479_v43 = vpop.f32.mrb[1].mxu1 }
 0x16c   : > { %503 = vst.msk [vmem:[#allocation2 + $0x20] sm:$0xff] %vm498_vm2, %v479_v43 }
 0x171   : > { %v996_v44 = vpop.f32.mrb[2].mxu0  ;;  %v1002_v45 = vpop.f32.mrb[2].mxu1 }
 0x172   : > { %502 = vst.msk [vmem:[#allocation2 + $0x18] sm:$0xff] %vm498_vm2, %v996_v44  ;;  %506 = vst.msk [vmem:[#allocation2 + $0x38] sm:$0xff] %vm498_vm2, %v1002_v45  ;;  %v469_v46 = vpop.f32.mrb[3].mxu0  ;;  %v489_v47 = vpop.f32.mrb[3].mxu1 }
 0x173   : > { %501 = vst.msk [vmem:[#allocation2 + $0x10] sm:$0xff] %vm498_vm2, %v469_v46  ;;  %505 = vst.msk [vmem:[#allocation2 + $0x30] sm:$0xff] %vm498_vm2, %v489_v47 }
 0x174 PF: > { %v563_v48 = vld [vmem:[#allocation2] sm:$0xff]  ;;  %v564_v49 = vld [vmem:[#allocation2 + $0x8] sm:$0xff]  ;;  %s925_s14 = sshll.u32 %s1223_s28, 5  ;;  %v1167_v53 = vmov 0   ;;  %vm546_vm3 = vcmask 523264   ;;  %vm561_vm4 = vcmask 516096  }
 0x175   : > { %v1059_v51 = vpack.c.bf16 %v564_v49, %v563_v48  ;;  %1125 = vset.pattern.permute.xlu0 %v1167_v53  ;;  %s516_s17 = scalar_lea.vmem %s1377_s1, %s925_s14  ;;  %1126 = vset.pattern.permute.xlu1 %v1167_v53  ;;  %v567_v55 = vld [vmem:[#allocation2 + $0x20] sm:$0xff]  ;;  %v568_v56 = vld [vmem:[#allocation2 + $0x28] sm:$0xff]  ;;  %vm688_vm5 = vcmask 130048   ;;  %s687_s19 = scalar_lea.vmem [#allocation3], %s925_s14 }
 0x176   : > { %v939_v57 = vld [vmem:[%s1231_s11] sm:$0xff]   ;;  %v946_v59 = vld [vmem:[%s1231_s11 + $0x8] sm:$0xff]   ;;  %v519_v62 = vld [vmem:[%s516_s17 + $0x10] sm:$0xff]  ;;  %v1067_v63 = vpack.c.bf16 %v568_v56, %v567_v55  ;;  %p931_p5 = scmp.ne.s32.totalorder %s1223_s28, 1 }
 0x177   : > { %1060 = vmatprep.subr.bf16.mxu0 %v1059_v51  ;;  %1094 = vmatprep.subr.bf16.mxu1 %v1059_v51  ;;  %v940_v58 = vunpack.c.l.bf16 %v939_v57  ;;  %v944_v60 = vunpack.c.l.bf16 %v946_v59  ;;  %v517_v61 = vld [vmem:[%s516_s17] sm:$0xff]  ;;  %v518_v2 = vld [vmem:[%s516_s17 + $0x8] sm:$0xff]  ;;  %v520_v3 = vld [vmem:[%s516_s17 + $0x18] sm:$0xff]  ;;  %v941_v5 = vunpack.c.h.bf16 %v939_v57  ;;  %v945_v6 = vunpack.c.h.bf16 %v946_v59 }
 0x178   : > { %1062 = vmatpush3.bf16.msra.mxu0 %v1059_v51  ;;  %1098 = vmatpush3.bf16.msra.mxu1 %v1059_v51  ;;  %v521_v27 = vld [vmem:[#allocation4] sm:$0x1]  ;;  %vm1169_vm6 = vmmov (!%p931_p5), 0   ;;  %v1170_v53 = vmov (!%p931_p5), 0.0   ;;  %v783_v56 = vld [vmem:[%s1382_s6 + $0x8] sm:$0xff] (!%p931_p5)  ;;  %vm858_vm7 = vcmask (!%p931_p5), 57344  }
 0x179   : > { %v566_v52 = vld [vmem:[#allocation2 + $0x18] sm:$0xff]  ;;  %1019 = vmatprep.mubr.msk.f32.mxu0 %vm546_vm3, %v940_v58  ;;  %1022 = vmatprep.mubr.msk.f32.mxu1 %vm546_vm3, %v944_v60  ;;  %v930_v31 = vld [vmem:[%s1381_s5] ss:$0 sm:$0xff] }
 0x17a   : > { %v565_v50 = vld [vmem:[#allocation2 + $0x10] sm:$0xff]  ;;  %v570_v1 = vld [vmem:[#allocation2 + $0x38] sm:$0xff]  ;;  %524 = vperm.xlu0 %1125, %v517_v61   ;;  %534 = vperm.xlu1 %1126, %v519_v62   ;;  %v782_v55 = vld [vmem:[%s1382_s6] sm:$0xff] (!%p931_p5) }
 0x17b   : > { %v1063_v54 = vpack.c.bf16 %v566_v52, %v565_v50  ;;  %v569_v0 = vld [vmem:[#allocation2 + $0x30] sm:$0xff]  ;;  %v1168_v50 = vmov (!%p931_p5), 0.0|0.0   ;;  %v1088_v59 = vpack.c.bf16 (!%p931_p5), %v783_v56, %v782_v55  ;;  %v698_v62 = vld [vmem:[%s1378_s2] sm:$0x1] (!%p931_p5) }
 0x17c   : > { %v1071_v4 = vpack.c.bf16 %v570_v1, %v569_v0 }
 0x17d   : > { %1064 = vmatprep.subr.bf16.mxu0 %v1063_v54  ;;  %1095 = vmatprep.subr.bf16.mxu1 %v1063_v54 }
 0x17e   : > { %1066 = vmatpush3.bf16.msra.mxu0 %v1063_v54  ;;  %1099 = vmatpush3.bf16.msra.mxu1 %v1063_v54 }
 0x17f   : > { %1068 = vmatprep.subr.bf16.mxu0 %v1067_v63  ;;  %1096 = vmatprep.subr.bf16.mxu1 %v1067_v63 }
 0x180   : > { %529 = vperm.xlu0 %1125, %v518_v2   ;;  %539 = vperm.xlu1 %1126, %v520_v3  }
 0x182   : > { %1070 = vmatpush3.bf16.msra.mxu0 %v1067_v63  ;;  %1100 = vmatpush3.bf16.msra.mxu1 %v1067_v63 }
 0x183   : > { %1072 = vmatprep.subr.bf16.mxu0 %v1071_v4  ;;  %1097 = vmatprep.subr.bf16.mxu1 %v1071_v4 }
 0x186   : > { %1074 = vmatpush3.bf16.msra.mxu0 %v1071_v4  ;;  %1101 = vmatpush3.bf16.msra.mxu1 %v1071_v4 }
 0x187   : > { %1075 = vmatprep.subr.bf16.mxu0 (!%p931_p5), %v1168_v50  ;;  %1087 = vmatprep.subr.bf16.mxu1 (!%p931_p5), %v1168_v50 }
 0x189   : > { %1020 = vmatmul.mubr.msk.f32.vlgmr.msra.gmra.mrb[0].mxu0 %vm546_vm3, %v941_v5  ;;  %1023 = vmatmul.mubr.msk.f32.vlgmr.msra.gmra.mrb[0].mxu1 %vm546_vm3, %v945_v6 }
 0x18a   : > { %1041 = vmatprep.mubr.msk.f32.mxu0 (!%p931_p5), %vm1169_vm6, %v1170_v53  ;;  %1048 = vmatprep.mubr.msk.f32.mxu1 (!%p931_p5), %vm1169_vm6, %v1170_v53 }
 0x18b   : > { %1089 = vmatpush3.bf16.msra.mxu1 (!%p931_p5), %v1088_v59 }
 0x1f9   : > { %v525_v7 = vpop.permute.xlu0 %524  ;;  %v535_v8 = vpop.permute.xlu1 %534 }
 0x1fa   : > { %v542_v9 = vmul.f32 %v940_v58, %v525_v7  ;;  %v544_v10 = vmul.f32 %v944_v60, %v535_v8 }
 0x1fc   : > { %v547_v13 = vsel %vm546_vm3, %v542_v9, 0.0  ;;  %v550_v16 = vsel %vm546_vm3, %v544_v10, 0.0 }
 0x1ff   : > { %v530_v11 = vpop.permute.xlu0 %529  ;;  %v540_v12 = vpop.permute.xlu1 %539 }
 0x200   : > { %v543_v14 = vmul.f32 %v941_v5, %v530_v11  ;;  %v545_v15 = vmul.f32 %v945_v6, %v540_v12  ;;  %v784_v6 = vld [vmem:[%s1383_s7] sm:$0x1] (!%p931_p5) }
 0x202   : > { %v548_v17 = vsel %vm546_vm3, %v543_v14, 0.0  ;;  %v552_v19 = vsel %vm546_vm3, %v545_v15, 0.0 }
 0x203   : > { %v549_v18 = vadd.f32 %v548_v17, %v547_v13 }
 0x205   : > { %v551_v20 = vadd.f32 %v550_v16, %v549_v18 }
 0x207   : > { %v553_v21 = vadd.f32 %v552_v19, %v551_v20 }
 0x209   : > { %v554_v22 = vrot.slane %v553_v21, 4 }
 0x20b   : > { %v555_v23 = vadd.f32 %v554_v22, %v553_v21 }
 0x20d   : > { %v556_v24 = vrot.slane %v555_v23, 2 }
 0x20f   : > { %v557_v25 = vadd.f32 %v556_v24, %v555_v23 }
 0x211   : > { %v558_v26 = vrot.slane %v557_v25, 1 }
 0x213   : > { %v559_v28 = vadd.f32 %v558_v26, %v557_v25 }
 0x215   : > { %v560_v29 = vadd.f32 %v559_v28, %v521_v27 }
 0x217   : > { %562 = vst.msk [vmem:[#allocation4] sm:$0x1] %vm561_vm4, %v560_v29 }
 0x21e   : > { %v697_v61 = vld [vmem:[#allocation4] sm:$0x1] (!%p931_p5) }
 0x21f   : > { %v699_v1 = vmul.f32 (!%p931_p5), %v698_v62, %v697_v61 }
 0x221   : > { %v700_v3 = vmul.f32 (!%p931_p5), 0.015625, %v699_v1 }
 0x25c   : > { %v1021_v30 = vpop.f32.mrb[0].mxu0  ;;  %v1024_v32 = vpop.f32.mrb[0].mxu1 }
 0x25d   : > { %v669_v33 = vmul.f32 %v1021_v30, %v530_v11  ;;  %v671_v34 = vmul.f32 %v1024_v32, %v540_v12  ;;  %v649_v35 = vpop.f32.mrb[1].mxu0  ;;  %v659_v36 = vpop.f32.mrb[1].mxu1 }
 0x25e   : > { %v668_v37 = vmul.f32 %v649_v35, %v525_v7  ;;  %v670_v38 = vmul.f32 %v659_v36, %v535_v8  ;;  %696 = sbr.rel (%p931_p5) target bundleno = 1064 (0x428), region = 60 }
 0x25f   : > { %v680_v39 = vadd.f32 %v930_v31, %v669_v33  ;;  %v682_v40 = vadd.f32 %v930_v31, %v671_v34 }
 0x260   : > { %v679_v41 = vadd.f32 %v930_v31, %v668_v37  ;;  %v681_v42 = vadd.f32 %v930_v31, %v670_v38 }
 0x261   : > { %v684_v43 = vmax.f32 %v680_v39, 0.0  ;;  %v686_v44 = vmax.f32 %v682_v40, 0.0 }
 0x262   : > { %v683_v45 = vmax.f32 %v679_v41, 0.0  ;;  %v685_v46 = vmax.f32 %v681_v42, 0.0 }
 0x263   : > { %690 = vst.msk [vmem:[%s687_s19 + $0x8] sm:$0xff] %vm688_vm5, %v684_v43  ;;  %692 = vst.msk [vmem:[%s687_s19 + $0x18] sm:$0xff] %vm688_vm5, %v686_v44 }
 0x264   : > { %689 = vst.msk [vmem:[%s687_s19] sm:$0xff] %vm688_vm5, %v683_v45  ;;  %691 = vst.msk [vmem:[%s687_s19 + $0x10] sm:$0xff] %vm688_vm5, %v685_v46 }
 0x26b   : > { %v701_v47 = vld [vmem:[#allocation3] sm:$0xff]  ;;  %v702_v48 = vld [vmem:[#allocation3 + $0x8] sm:$0xff]  ;;  %v703_v49 = vld [vmem:[#allocation3 + $0x10] sm:$0xff] }
 0x26c   : > { %v1076_v51 = vpack.c.bf16 %v702_v48, %v701_v47  ;;  %v704_v52 = vld [vmem:[#allocation3 + $0x18] sm:$0xff]  ;;  %v705_v57 = vld [vmem:[#allocation3 + $0x20] sm:$0xff]  ;;  %v706_v58 = vld [vmem:[#allocation3 + $0x28] sm:$0xff] }
 0x26d   : > { %v1079_v54 = vpack.c.bf16 %v704_v52, %v703_v49  ;;  %v1082_v60 = vpack.c.bf16 %v706_v58, %v705_v57  ;;  %v707_v63 = vld [vmem:[#allocation3 + $0x30] sm:$0xff]  ;;  %v708_v0 = vld [vmem:[#allocation3 + $0x38] sm:$0xff] }
 0x26e   : > { %1077 = vmatpush3.bf16.msra.mxu0 %v1076_v51  ;;  %v1085_v2 = vpack.c.bf16 %v708_v0, %v707_v63 }
 0x26f   : > { %1078 = vmatprep.subr.bf16.mxu0 %v1168_v50 }
 0x272   : > { %1080 = vmatpush3.bf16.msra.mxu0 %v1079_v54 }
 0x273   : > { %1081 = vmatprep.subr.bf16.mxu0 %v1168_v50 }
 0x276   : > { %1083 = vmatpush3.bf16.msra.mxu0 %v1082_v60 }
 0x277   : > { %1084 = vmatprep.subr.bf16.mxu0 %v1168_v50 }
 0x27a   : > { %1086 = vmatpush3.bf16.msra.mxu0 %v1085_v2 }
 0x27d   : > { %1042 = vmatmul.mubr.msk.f32.vlgmr.msra.gmra.mrb[0].mxu0 %vm546_vm3, %v700_v3 }
 0x350   : > { %v778_v4 = vpop.f32.mrb[0].mxu0 }
 0x351   : > { %v1043_v5 = vpop.f32.mrb[1].mxu0  ;;  %1049 = vmatmul.mubr.msk.f32.vlgmr.msra.gmra.mrb[0].mxu1 %vm688_vm5, %v778_v4 }
 0x424   : > { %v854_v7 = vpop.f32.mrb[0].mxu1 }
 0x425   : > { %v855_v8 = vadd.f32 %v854_v7, %v784_v6  ;;  %v1050_v9 = vpop.f32.mrb[1].mxu1 }
 0x427   : > { %859 = vst.msk [vmem:[#allocation5] sm:$0x1] %vm858_vm7, %v855_v8 }
 0x428 PF: > { %p1106_p6 = scmp.eq.s32.totalorder %s1223_s28, 1  ;;  %s1171_s30 = smov [#allocation5]  }
 0x429   : > { %s867_s9 = sshll.u32 %s1171_s30, 4  ;;  %s868_s9 = int_to_ptr.vmem [resolvable:$true] %s867_s9 }
 0x42a   : > { %s1127_s10 = scalar_lea.vmem %s868_s9, 16  ;;  %s1133_s12 = scalar_lea.vmem %s868_s9, 32 }
 0x42b   : > { %p1128_p7 = scmp.ne.s32.totalorder %s868_s9, %s1127_s10  ;;  %p1134_p10 = scmp.lt.s32.totalorder %s868_s9, %s868_s9 }
 0x42c   : > { %p1135_p11 = scmp.lt.s32.totalorder %s1133_s12, %s1127_s10 }
 0x42d   : > { %p1129_p8 = pnand %p1128_p7, %p1106_p6 }
 0x42e   : > { %p1136_p12 = por %p1135_p11, %p1134_p10 }
 0x42f   : > { %p1130_p9 = pneg %p1129_p8 }
 0x431   : > { %p1137_p13 = pnand %p1136_p12, %p1130_p9 }
 0x433   : > { %1140 = shalt.err (!%p1137_p13)
}
 0x434   : > { %s1141_s15 = scalar_lea.hbm %s1384_s8, 16 }
 0x435   : > { %p1142_p0 = scmp.ne.s32.totalorder %s1384_s8, %s1141_s15  ;;  %p1147_p3 = scmp.lt.u32.totalorder %s1141_s15, %s1384_s8 }
 0x437   : > { %p1143_p1 = pnand %p1142_p0, %p1106_p6 }
 0x439   : > { %p1144_p2 = pneg %p1143_p1 }
 0x43b   : > { %p1149_p4 = pnand %p1147_p3, %p1144_p2 }
 0x43d   : > { %1152 = shalt.err (!%p1149_p4)
}
 0x43e   : > { %1103 = dma.vmem_to_hbm [thread:$0]  (%p1106_p6), %s868_s9, 16, %s1384_s8, [#allocation6]  }
 0x43f   : > { %1158 = dma.done.wait (%p1106_p6), [#allocation6], 16  }
 0x440   : > { %1160 = vsyncadd (%p1106_p6), [#allocation6], 4294967280 }
 0x441 PF: > { %s19_s27 = sadd.s32 1, %s1163_s27  }
 0x442   : > { %p16_p5 = scmp.ge.s32.totalorder %s19_s27, 4  }
 0x444   :  { %18 = sbr.rel (!%p16_p5) target bundleno = 1 (0x1), region = 89 }
 0x44b   :  { %880 = vsyncpa [#allocation6], 1 }
 0x44c   :  { %882 = vsyncpa [#allocation6 + $0x1], 1 }

</bundles_post_ra>
